<compile_context>
chip_gen: v6e
topology: v6e:2x2x1
jax: 0.10.0
libtpu: 0.0.40
codegen_flags: <defaults>
</compile_context>

<pallas_src>
import functools
import math

import jax
import jax.numpy as jnp
from jax.experimental import pallas as pl
from jax.experimental.pallas import tpu as pltpu


# ---------------------------------------------------------------------------
# Capability probe: single-buffered ("resident") blocks via pipeline_mode.
# ---------------------------------------------------------------------------
try:
    _ = pl.BlockSpec((8, 128), lambda i: (0, 0), pipeline_mode=pl.Buffered(1))
    _RESIDENT_BUFFERS = 1
except Exception:  # older JAX without pipeline_mode / Buffered
    _RESIDENT_BUFFERS = 2


def _resident_spec(shape, index_map):
    """BlockSpec for a block whose index never changes.

    Single-buffered when supported (saves VMEM).  Otherwise default double
    buffering: the redundant re-DMA is still skipped because the block index is
    constant across grid steps, so the only cost is the extra buffer.
    """
    if _RESIDENT_BUFFERS == 1:
        return pl.BlockSpec(shape, index_map, pipeline_mode=pl.Buffered(1))
    return pl.BlockSpec(shape, index_map)


def _gelu_new(x):
    # gelu_new: 0.5 * x * (1 + tanh(sqrt(2/pi) * (x + 0.044715 * x^3)))
    c = math.sqrt(2.0 / math.pi)
    return 0.5 * x * (1.0 + jnp.tanh(c * (x + 0.044715 * (x ** 3))))


def _round_up(x, m):
    return (x + m - 1) // m * m


def _vmem_budget_bytes():
    """~85% of per-core VMEM (v5e/v6e: 128 MiB, v7x: 64 MiB)."""
    try:
        cap = int(pltpu.get_tpu_info().vmem_capacity_bytes)
    except Exception:
        cap = 64 * 2**20  # conservative (v7x-sized) fallback
    return int(0.85 * cap)


# ---------------------------------------------------------------------------
# Kernels
# ---------------------------------------------------------------------------
def mlp_resident_kernel(x_ref, wfc_ref, bfc_ref, wproj_ref, bproj_ref, o_ref):
    # x_ref:     (tm, E)    bf16 row tile
    # wfc_ref:   (E, I)     full c_fc weight, resident in VMEM
    # bfc_ref:   (1, I)     f32
    # wproj_ref: (I, E)     full c_proj weight, resident in VMEM
    # bproj_ref: (1, E)     f32
    # o_ref:     (tm, E)
    h = jnp.dot(x_ref[...], wfc_ref[...], preferred_element_type=jnp.float32)
    h = _gelu_new(h + bfc_ref[...])
    h = h.astype(wproj_ref.dtype)  # back to MXU-native width for 2nd matmul
    out = jnp.dot(h, wproj_ref[...], preferred_element_type=jnp.float32)
    out = out + bproj_ref[...]
    # Dropout in eval mode is the identity (inference semantics).
    # TODO(synk): training-mode dropout (random masking) not implemented.
    o_ref[...] = out.astype(o_ref.dtype)


def mlp_reduction_kernel(x_ref, wfc_ref, bfc_ref, wproj_ref, bproj_ref, o_ref,
                         acc_ref):
    # Fallback schedule (weights too large to hold resident): inner dim tiled
    # as the last, "arbitrary" grid axis; f32 VMEM accumulator across it.
    n = pl.program_id(1)

    h = jnp.dot(x_ref[...], wfc_ref[...], preferred_element_type=jnp.float32)
    h = _gelu_new(h + bfc_ref[...])
    h = h.astype(wproj_ref.dtype)
    contrib = jnp.dot(h, wproj_ref[...], preferred_element_type=jnp.float32)

    @pl.when(n == 0)
    def _():
        acc_ref[...] = contrib          # folded init: no zero-store + reload

    @pl.when(n > 0)
    def _():
        acc_ref[...] += contrib

    @pl.when(n == pl.num_programs(1) - 1)
    def _():
        o_ref[...] = (acc_ref[...] + bproj_ref[...]).astype(o_ref.dtype)


# ---------------------------------------------------------------------------
# Sizing helpers
# ---------------------------------------------------------------------------
def _resident_vmem_bytes(tm, e, i, xb, wb):
    return (2 * tm * e * xb                                # x tile (double-buffered)
            + 2 * tm * e * xb                              # out tile (double-buffered)
            + _RESIDENT_BUFFERS * (2 * e * i) * wb         # resident Wfc + Wproj
            + _RESIDENT_BUFFERS * (i + e) * 4              # resident f32 biases
            + tm * i * 4                                   # f32 h intermediate
            + tm * e * 4)                                  # f32 out intermediate


def _reduction_vmem_bytes(tm, tn, e, xb, wb):
    return (2 * tm * e * xb                                # x tile
            + 2 * tm * e * xb                              # out tile
            + 2 * (e * tn + tn * e) * wb                   # streamed weight tiles
            + 2 * (tn + e) * 4                             # bias tiles
            + tm * e * 4                                   # f32 accumulator scratch
            + tm * tn * 4)                                 # f32 h intermediate


def _pick_inner_tile(i_pad, tn_max):
    """Largest multiple of 128 (<= tn_max) dividing i_pad (i_pad % 128 == 0)."""
    if i_pad <= tn_max:
        return i_pad
    for cand in range(tn_max - tn_max % 128, 127, -128):
        if i_pad % cand == 0:
            return cand
    return 128


# ---------------------------------------------------------------------------
# Wrapper
# ---------------------------------------------------------------------------
@functools.partial(jax.jit, static_argnames=("tm", "tn", "compute_dtype"))
def mlp_forward(x, w_fc, b_fc, w_proj, b_proj, *, tm=1024, tn=1536,
                compute_dtype=jnp.bfloat16):
    """x: (batch, seq, n_embed) -> (batch, seq, n_embed)."""
    batch, seq, n_embed = x.shape
    inner_dim = w_fc.shape[1]
    out_dtype = x.dtype
    M = batch * seq

    # Lane-dense padding of the feature dims to multiples of 128.
    e_pad = _round_up(n_embed, 128)
    i_pad = _round_up(inner_dim, 128)

    xb = jnp.dtype(compute_dtype).itemsize
    wb = xb
    ob = jnp.dtype(out_dtype).itemsize

    # Cast matmul operands to bf16 (MXU-native, halves weight HBM traffic);
    # biases stay f32 and are added on the f32 accumulator.
    x2d = x.reshape(M, n_embed).astype(compute_dtype)
    wfc = w_fc.astype(compute_dtype)
    wproj = w_proj.astype(compute_dtype)
    bfc = b_fc.astype(jnp.float32).reshape(1, inner_dim)
    bproj = b_proj.astype(jnp.float32).reshape(1, n_embed)

    if e_pad != n_embed:
        x2d = jnp.pad(x2d, ((0, 0), (0, e_pad - n_embed)))
        wfc = jnp.pad(wfc, ((0, e_pad - n_embed), (0, 0)))
        wproj = jnp.pad(wproj, ((0, 0), (0, e_pad - n_embed)))
        bproj = jnp.pad(bproj, ((0, 0), (0, e_pad - n_embed)))
    if i_pad != inner_dim:
        wfc = jnp.pad(wfc, ((0, 0), (0, i_pad - inner_dim)))
        wproj = jnp.pad(wproj, ((0, i_pad - inner_dim), (0, 0)))
        bfc = jnp.pad(bfc, ((0, 0), (0, i_pad - inner_dim)))

    budget = _vmem_budget_bytes()

    # Candidate row tiles: multiples of 16, never larger than requested tm or
    # the (rounded) row count.
    tm_cap = _round_up(M, 16)
    tm_pref = min(_round_up(tm, 16), tm_cap)
    cands = sorted({min(t, tm_pref) for t in (1024, 512, 256, 128, 64, 32, 16)}
                   | {tm_pref}, reverse=True)

    # ---- Schedule selection: weight-resident (preferred) or reduction-tiled.
    tm_eff = None
    for cand in cands:
        if _resident_vmem_bytes(cand, e_pad, i_pad, xb, wb) <= budget:
            tm_eff = cand
            break
    use_resident = tm_eff is not None

    if use_resident:
        est = _resident_vmem_bytes(tm_eff, e_pad, i_pad, xb, wb)
        tn_eff = i_pad
    else:
        tn_eff = _pick_inner_tile(i_pad, tn)
        tm_eff = cands[-1]
        for cand in cands:
            if _reduction_vmem_bytes(cand, tn_eff, e_pad, xb, wb) <= budget:
                tm_eff = cand
                break
        est = _reduction_vmem_bytes(tm_eff, tn_eff, e_pad, xb, wb)

    M_pad = _round_up(M, tm_eff)
    if M_pad != M:
        x2d = jnp.pad(x2d, ((0, M_pad - M), (0, 0)))
    num_m = M_pad // tm_eff

    vmem_limit = int(min(max(int(1.25 * est), 32 * 2**20), budget))
    flops = 4 * M_pad * e_pad * i_pad

    if use_resident:
        cost = pl.CostEstimate(
            flops=flops,
            transcendentals=M_pad * i_pad,
            bytes_accessed=(M_pad * e_pad * xb + M_pad * e_pad * ob
                            + 2 * e_pad * i_pad * wb
                            + (i_pad + e_pad) * 4),
        )
        out2d = pl.pallas_call(
            mlp_resident_kernel,
            out_shape=jax.ShapeDtypeStruct((M_pad, e_pad), out_dtype),
            grid_spec=pltpu.PrefetchScalarGridSpec(
                num_scalar_prefetch=0,
                grid=(num_m,),
                in_specs=[
                    pl.BlockSpec((tm_eff, e_pad), lambda m: (m, 0)),   # x rows
                    _resident_spec((e_pad, i_pad), lambda m: (0, 0)),  # Wfc resident
                    _resident_spec((1, i_pad), lambda m: (0, 0)),      # b_fc
                    _resident_spec((i_pad, e_pad), lambda m: (0, 0)),  # Wproj resident
                    _resident_spec((1, e_pad), lambda m: (0, 0)),      # b_proj
                ],
                out_specs=pl.BlockSpec((tm_eff, e_pad), lambda m: (m, 0)),
            ),
            compiler_params=pltpu.CompilerParams(
                dimension_semantics=("parallel",),
                vmem_limit_bytes=vmem_limit,
            ),
            cost_estimate=cost,
        )(x2d, wfc, bfc, wproj, bproj)
    else:
        num_n = i_pad // tn_eff
        cost = pl.CostEstimate(
            flops=flops,
            transcendentals=M_pad * i_pad,
            bytes_accessed=(M_pad * e_pad * xb + M_pad * e_pad * ob
                            + num_m * 2 * e_pad * i_pad * wb
                            + (i_pad + e_pad) * 4),
        )
        out2d = pl.pallas_call(
            mlp_reduction_kernel,
            out_shape=jax.ShapeDtypeStruct((M_pad, e_pad), out_dtype),
            grid_spec=pltpu.PrefetchScalarGridSpec(
                num_scalar_prefetch=0,
                grid=(num_m, num_n),
                in_specs=[
                    pl.BlockSpec((tm_eff, e_pad), lambda m, n: (m, 0)),  # x rows
                    pl.BlockSpec((e_pad, tn_eff), lambda m, n: (0, n)),  # Wfc tile
                    pl.BlockSpec((1, tn_eff), lambda m, n: (0, n)),      # b_fc tile
                    pl.BlockSpec((tn_eff, e_pad), lambda m, n: (n, 0)),  # Wproj tile
                    pl.BlockSpec((1, e_pad), lambda m, n: (0, 0)),       # b_proj
                ],
                out_specs=pl.BlockSpec((tm_eff, e_pad), lambda m, n: (m, 0)),
                scratch_shapes=[pltpu.VMEM((tm_eff, e_pad), jnp.float32)],
            ),
            compiler_params=pltpu.CompilerParams(
                dimension_semantics=("parallel", "arbitrary"),
                vmem_limit_bytes=vmem_limit,
            ),
            cost_estimate=cost,
        )(x2d, wfc, bfc, wproj, bproj)

    out2d = out2d[:M, :n_embed]
    return out2d.reshape(batch, seq, n_embed)


def mlp_reference(x, w_fc, b_fc, w_proj, b_proj):
    h = _gelu_new(jnp.einsum("bse,ei->bsi", x, w_fc) + b_fc)
    return jnp.einsum("bsi,ie->bse", h, w_proj) + b_proj


if __name__ == "__main__":
    batch, seq = 2, 8
    n_embed = 32
    inner_dim = 4 * n_embed  # 128

    key = jax.random.PRNGKey(0)
    kx, kfc, kproj = jax.random.split(key, 3)

    # Deterministic parameter init matching Conv1D.__init__: N(0, 0.02), zero bias.
    x = jax.random.normal(kx, (batch, seq, n_embed), dtype=jnp.float32)
    w_fc = 0.02 * jax.random.normal(kfc, (n_embed, inner_dim), dtype=jnp.float32)
    b_fc = jnp.zeros((inner_dim,), dtype=jnp.float32)
    w_proj = 0.02 * jax.random.normal(kproj, (inner_dim, n_embed), dtype=jnp.float32)
    b_proj = jnp.zeros((n_embed,), dtype=jnp.float32)

    out = mlp_forward(x, w_fc, b_fc, w_proj, b_proj)
    out = jax.block_until_ready(out)

    ref = mlp_reference(x, w_fc, b_fc, w_proj, b_proj)
    assert out.shape == (batch, seq, n_embed)
    # Kernel runs the matmuls with bf16 operands (f32 accumulation); compare
    # against the f32 reference with bf16-appropriate tolerance.
    assert jnp.allclose(out, ref, atol=5e-3, rtol=5e-2), "mismatch vs reference"

    print("KERNEL_OK")
</pallas_src>

<mosaic_0001>
module attributes {stable_mosaic.version = 11 : i64} {
  func.func @mlp_resident_kernel(%arg0: i32, %arg1: memref<16x128xbf16, #tpu.memory_space<vmem>>, %arg2: memref<128x128xbf16, #tpu.memory_space<vmem>>, %arg3: memref<1x128xf32, #tpu.memory_space<vmem>>, %arg4: memref<128x128xbf16, #tpu.memory_space<vmem>>, %arg5: memref<1x128xf32, #tpu.memory_space<vmem>>, %arg6: memref<16x128xf32, #tpu.memory_space<vmem>>) attributes {dimension_semantics = [#tpu.dimension_semantics<parallel>], iteration_bounds = array<i64: 1>, scalar_prefetch = 0 : i64, scratch_operands = 0 : i64, tpu.core_type = #tpu.core_type<tc>, window_params = [{transform_indices = @transform_0, window_bounds = array<i64: 16, 128>}, {pipeline_mode = #tpu.pipeline_mode<synchronous>, transform_indices = @transform_1, window_bounds = array<i64: 128, 128>}, {pipeline_mode = #tpu.pipeline_mode<synchronous>, transform_indices = @transform_2, window_bounds = array<i64: 1, 128>}, {pipeline_mode = #tpu.pipeline_mode<synchronous>, transform_indices = @transform_3, window_bounds = array<i64: 128, 128>}, {pipeline_mode = #tpu.pipeline_mode<synchronous>, transform_indices = @transform_4, window_bounds = array<i64: 1, 128>}, {transform_indices = @transform_5, window_bounds = array<i64: 16, 128>}]} {
    %c0 = arith.constant 0 : index
    %c0_0 = arith.constant 0 : index
    %0 = vector.load %arg1[%c0, %c0_0] : memref<16x128xbf16, #tpu.memory_space<vmem>>, vector<16x128xbf16>
    %c0_1 = arith.constant 0 : index
    %c0_2 = arith.constant 0 : index
    %1 = vector.load %arg2[%c0_1, %c0_2] : memref<128x128xbf16, #tpu.memory_space<vmem>>, vector<128x128xbf16>
    %cst = arith.constant dense<0.000000e+00> : vector<16x128xf32>
    %2 = tpu.matmul %0, %1, %cst {dimension_numbers = #tpu.dot_dimension_numbers<[1], [0], [0], [1], [0, 0, 1, 1], [], []>} : vector<16x128xbf16>, vector<128x128xbf16>, vector<16x128xf32> -> vector<16x128xf32>
    %c0_3 = arith.constant 0 : index
    %c0_4 = arith.constant 0 : index
    %3 = vector.load %arg3[%c0_3, %c0_4] : memref<1x128xf32, #tpu.memory_space<vmem>>, vector<1x128xf32>
    %4 = vector.broadcast %3 : vector<1x128xf32> to vector<16x128xf32>
    %5 = arith.addf %2, %4 : vector<16x128xf32>
    %cst_5 = arith.constant 5.000000e-01 : f32
    %6 = vector.broadcast %cst_5 : f32 to vector<16x128xf32>
    %7 = arith.mulf %6, %5 : vector<16x128xf32>
    %8 = arith.mulf %5, %5 : vector<16x128xf32>
    %9 = arith.mulf %5, %8 : vector<16x128xf32>
    %cst_6 = arith.constant 4.471500e-02 : f32
    %10 = vector.broadcast %cst_6 : f32 to vector<16x128xf32>
    %11 = arith.mulf %10, %9 : vector<16x128xf32>
    %12 = arith.addf %5, %11 : vector<16x128xf32>
    %cst_7 = arith.constant 0.797884583 : f32
    %13 = vector.broadcast %cst_7 : f32 to vector<16x128xf32>
    %14 = arith.mulf %13, %12 : vector<16x128xf32>
    %15 = math.tanh %14 : vector<16x128xf32>
    %cst_8 = arith.constant 1.000000e+00 : f32
    %16 = vector.broadcast %cst_8 : f32 to vector<16x128xf32>
    %17 = arith.addf %16, %15 : vector<16x128xf32>
    %18 = arith.mulf %7, %17 : vector<16x128xf32>
    %19 = arith.truncf %18 : vector<16x128xf32> to vector<16x128xbf16>
    %c0_9 = arith.constant 0 : index
    %c0_10 = arith.constant 0 : index
    %20 = vector.load %arg4[%c0_9, %c0_10] : memref<128x128xbf16, #tpu.memory_space<vmem>>, vector<128x128xbf16>
    %cst_11 = arith.constant dense<0.000000e+00> : vector<16x128xf32>
    %21 = tpu.matmul %19, %20, %cst_11 {dimension_numbers = #tpu.dot_dimension_numbers<[1], [0], [0], [1], [0, 0, 1, 1], [], []>} : vector<16x128xbf16>, vector<128x128xbf16>, vector<16x128xf32> -> vector<16x128xf32>
    %c0_12 = arith.constant 0 : index
    %c0_13 = arith.constant 0 : index
    %22 = vector.load %arg5[%c0_12, %c0_13] : memref<1x128xf32, #tpu.memory_space<vmem>>, vector<1x128xf32>
    %23 = vector.broadcast %22 : vector<1x128xf32> to vector<16x128xf32>
    %24 = arith.addf %21, %23 : vector<16x128xf32>
    %c0_14 = arith.constant 0 : index
    %c0_15 = arith.constant 0 : index
    %25 = vector.load %arg6[%c0_14, %c0_15] : memref<16x128xf32, #tpu.memory_space<vmem>>, vector<16x128xf32>
    tpu.vector_store %arg6[%c0_14, %c0_15], %24 {strides = array<i32>} : memref<16x128xf32, #tpu.memory_space<vmem>>, vector<16x128xf32>,
    return
  }
  func.func @transform_0(%arg0: i32) -> (i32, i32) {
    %c0_i32 = arith.constant 0 : i32
    %c0_i32_0 = arith.constant 0 : i32
    return %arg0, %c0_i32 : i32, i32
  }
  func.func @transform_1(%arg0: i32) -> (i32, i32) {
    %c0_i32 = arith.constant 0 : i32
    %c0_i32_0 = arith.constant 0 : i32
    %c0_i32_1 = arith.constant 0 : i32
    return %c0_i32, %c0_i32_0 : i32, i32
  }
  func.func @transform_2(%arg0: i32) -> (i32, i32) {
    %c0_i32 = arith.constant 0 : i32
    %c0_i32_0 = arith.constant 0 : i32
    %c0_i32_1 = arith.constant 0 : i32
    return %c0_i32, %c0_i32_0 : i32, i32
  }
  func.func @transform_3(%arg0: i32) -> (i32, i32) {
    %c0_i32 = arith.constant 0 : i32
    %c0_i32_0 = arith.constant 0 : i32
    %c0_i32_1 = arith.constant 0 : i32
    return %c0_i32, %c0_i32_0 : i32, i32
  }
  func.func @transform_4(%arg0: i32) -> (i32, i32) {
    %c0_i32 = arith.constant 0 : i32
    %c0_i32_0 = arith.constant 0 : i32
    %c0_i32_1 = arith.constant 0 : i32
    return %c0_i32, %c0_i32_0 : i32, i32
  }
  func.func @transform_5(%arg0: i32) -> (i32, i32) {
    %c0_i32 = arith.constant 0 : i32
    %c0_i32_0 = arith.constant 0 : i32
    return %arg0, %c0_i32 : i32, i32
  }
}

</mosaic_0001>

<bundles_post_ra>
// kernel: mlp_forward.1
= control target key start
LH: loop header
LB: loop body
LE: loop exit
PB: predicated region body
PF: predicated region fallthrough
CT: control target
= control target key end

     0   :  { %v378_v0 = vmov 0.0   ;;  %vm379_vm0 = vmmov 0   ;;  %s473_s1 = inlined_call_operand.vmem [shape: bf16[128,128], index: 1, kind: input, shape index: {}]   ;;  %s474_s0 = inlined_call_operand.vmem [shape: bf16[16,128], index: 0, kind: input, shape index: {}]   ;;  %s475_s3 = inlined_call_operand.vmem [shape: bf16[128,128], index: 3, kind: input, shape index: {}]   ;;  %s476_s2 = inlined_call_operand.vmem [shape: f32[1,128], index: 2, kind: input, shape index: {}]   ;;  %s477_s4 = inlined_call_operand.vmem [shape: f32[1,128], index: 4, kind: input, shape index: {}]   ;;  %s478_s5 = inlined_call_operand.vmem [shape: f32[16,128], index: 5, kind: output, shape index: {}]  }
   0x1   :  { %315 = vmatprep.subr.bf16.mxu0 %v378_v0  ;;  %v357_v1 = vld [vmem:[%s473_s1 + $0x38] sm:$0xff]   ;;  %331 = vmatprep.mubr.msk.bf16.mxu0 %vm379_vm0, %v378_v0  ;;  %v358_v2 = vld [vmem:[%s473_s1 + $0x30] sm:$0xff]   ;;  %v359_v3 = vld [vmem:[%s473_s1 + $0x28] sm:$0xff]  }
   0x2   :  { %335 = vmatprep.subr.bf16.mxu1 %v378_v0  ;;  %351 = vmatprep.mubr.msk.bf16.mxu1 %vm379_vm0, %v378_v0  ;;  %v360_v4 = vld [vmem:[%s473_s1 + $0x20] sm:$0xff]   ;;  %v361_v5 = vld [vmem:[%s473_s1 + $0x18] sm:$0xff]   ;;  %v362_v6 = vld [vmem:[%s473_s1 + $0x10] sm:$0xff]  }
   0x3   :  { %316 = vmatpush3.bf16.msra.mxu0 %v357_v1  ;;  %v363_v7 = vld [vmem:[%s473_s1 + $0x8] sm:$0xff]   ;;  %v364_v8 = vld [vmem:[%s473_s1] sm:$0xff]   ;;  %v366_v10 = vld [vmem:[%s475_s3 + $0x38] sm:$0xff]  }
   0x4   :  { %317 = vmatprep.subr.bf16.mxu0 %v378_v0  ;;  %v365_v9 = vld [vmem:[%s474_s0] sm:$0xff]   ;;  %336 = vmatpush3.bf16.msra.mxu1 %v366_v10  ;;  %v367_v11 = vld [vmem:[%s475_s3 + $0x30] sm:$0xff]   ;;  %v368_v12 = vld [vmem:[%s475_s3 + $0x28] sm:$0xff]  }
   0x5   :  { %337 = vmatprep.subr.bf16.mxu1 %v378_v0  ;;  %v369_v13 = vld [vmem:[%s475_s3 + $0x20] sm:$0xff]   ;;  %v370_v14 = vld [vmem:[%s475_s3 + $0x18] sm:$0xff]   ;;  %v371_v15 = vld [vmem:[%s475_s3 + $0x10] sm:$0xff]  }
   0x6   :  { %v372_v16 = vld [vmem:[%s475_s3 + $0x8] sm:$0xff]   ;;  %v373_v17 = vld [vmem:[%s475_s3] sm:$0xff]  }
   0x7   :  { %318 = vmatpush3.bf16.msra.mxu0 %v358_v2  ;;  %v278_v18 = vld [vmem:[%s476_s2] ss:$0 sm:$0xff] }
   0x8   :  { %319 = vmatprep.subr.bf16.mxu0 %v378_v0  ;;  %338 = vmatpush3.bf16.msra.mxu1 %v367_v11  ;;  %v288_v44 = vld [vmem:[%s477_s4] ss:$0 sm:$0xff] }
   0x9   :  { %339 = vmatprep.subr.bf16.mxu1 %v378_v0 }
   0xb   :  { %320 = vmatpush3.bf16.msra.mxu0 %v359_v3 }
   0xc   :  { %321 = vmatprep.subr.bf16.mxu0 %v378_v0  ;;  %340 = vmatpush3.bf16.msra.mxu1 %v368_v12 }
   0xd   :  { %341 = vmatprep.subr.bf16.mxu1 %v378_v0 }
   0xf   :  { %322 = vmatpush3.bf16.msra.mxu0 %v360_v4 }
  0x10   :  { %323 = vmatprep.subr.bf16.mxu0 %v378_v0  ;;  %342 = vmatpush3.bf16.msra.mxu1 %v369_v13 }
  0x11   :  { %343 = vmatprep.subr.bf16.mxu1 %v378_v0 }
  0x13   :  { %324 = vmatpush3.bf16.msra.mxu0 %v361_v5 }
  0x14   :  { %325 = vmatprep.subr.bf16.mxu0 %v378_v0  ;;  %344 = vmatpush3.bf16.msra.mxu1 %v370_v14 }
  0x15   :  { %345 = vmatprep.subr.bf16.mxu1 %v378_v0 }
  0x17   :  { %326 = vmatpush3.bf16.msra.mxu0 %v362_v6 }
  0x18   :  { %327 = vmatprep.subr.bf16.mxu0 %v378_v0  ;;  %346 = vmatpush3.bf16.msra.mxu1 %v371_v15 }
  0x19   :  { %347 = vmatprep.subr.bf16.mxu1 %v378_v0 }
  0x1b   :  { %328 = vmatpush3.bf16.msra.mxu0 %v363_v7 }
  0x1c   :  { %329 = vmatprep.subr.bf16.mxu0 %v378_v0  ;;  %348 = vmatpush3.bf16.msra.mxu1 %v372_v16 }
  0x1d   :  { %349 = vmatprep.subr.bf16.mxu1 %v378_v0 }
  0x1f   :  { %330 = vmatpush3.bf16.msra.mxu0 %v364_v8 }
  0x20   :  { %350 = vmatpush3.bf16.msra.mxu1 %v373_v17 }
  0x22   :  { %332 = vmatmul.mubr.bf16.vlgmr.msra.gmra.mxu0 %v365_v9 }
  0xe2   :  { %v134_v19 = vpop.f32.mrf.mxu0 }
  0xe3   :  { %v135_v20 = vadd.f32 %v278_v18, %v134_v19 }
  0xe4   :  { %v333_v21 = vpop.f32.mrf.mxu0 }
  0xe5   :  { %v143_v22 = vmul.f32 %v135_v20, %v135_v20  ;;  %v141_v38 = vmul.f32 0.5, %v135_v20 }
  0xe6   :  { %v137_v23 = vpop.f32.mrf.mxu0 }
  0xe7   :  { %v145_v24 = vmul.f32 %v143_v22, %v135_v20  ;;  %v138_v25 = vadd.f32 %v278_v18, %v137_v23 }
  0xe8   :  { %v334_v26 = vpop.f32.mrf.mxu0 }
  0xe9   :  { %v147_v27 = vmul.f32 0.044715, %v145_v24  ;;  %v144_v28 = vmul.f32 %v138_v25, %v138_v25  ;;  %v142_v39 = vmul.f32 0.5, %v138_v25 }
  0xeb   :  { %v149_v29 = vadd.f32 %v147_v27, %v135_v20  ;;  %v146_v30 = vmul.f32 %v144_v28, %v138_v25 }
  0xed   :  { %v151_v31 = vmul.f32 0.7978846, %v149_v29  ;;  %v148_v32 = vmul.f32 0.044715, %v146_v30 }
  0xef   :  { %374 = vtanh.f32 %v151_v31  ;;  %v150_v33 = vadd.f32 %v148_v32, %v138_v25 }
  0xf1   :  { %v152_v34 = vmul.f32 0.7978846, %v150_v33 }
  0xf3   :  { %376 = vtanh.f32 %v152_v34 }
  0xfc   :  { %v375_v35 = vpop.eup %374 }
  0xfd   :  { %v155_v36 = vadd.f32 1.0, %v375_v35 }
  0xff   :  { %v157_v41 = vmul.f32 %v155_v36, %v141_v38 }
 0x100   :  { %v377_v37 = vpop.eup %376 }
 0x101   :  { %v156_v40 = vadd.f32 1.0, %v377_v37 }
 0x103   :  { %v158_v42 = vmul.f32 %v156_v40, %v142_v39 }
 0x105   :  { %v159_v43 = vpack.c.bf16 %v158_v42, %v157_v41 }
 0x107   :  { %352 = vmatmul.mubr.bf16.vlgmr.msra.gmra.mxu1 %v159_v43 }
 0x1c7   :  { %v265_v45 = vpop.f32.mrf.mxu1 }
 0x1c8   :  { %v266_v46 = vadd.f32 %v288_v44, %v265_v45 }
 0x1c9   :  { %v353_v47 = vpop.f32.mrf.mxu1 }
 0x1ca   :  { %272 = vst [vmem:[%s478_s5] sm:$0xff] %v266_v46 }
 0x1cb   :  { %v268_v48 = vpop.f32.mrf.mxu1 }
 0x1cc   :  { %v269_v49 = vadd.f32 %v288_v44, %v268_v48 }
 0x1cd   :  { %v354_v50 = vpop.f32.mrf.mxu1 }
 0x1ce   :  { %273 = vst [vmem:[%s478_s5 + $0x8] sm:$0xff] %v269_v49 }

</bundles_post_ra>
